<compile_context>
chip_gen: v5e
topology: v5e:2x2
jax: 0.10.0
libtpu: 0.0.40
codegen_flags: <defaults>
</compile_context>

<pallas_src>
import functools

import jax
import jax.numpy as jnp
from jax import lax
from jax.experimental import pallas as pl
from jax.experimental.pallas import tpu as pltpu

LN_EPS = 1e-5                       # torch.nn.LayerNorm default
_VMEM_LIMIT = 48 * 1024 * 1024      # > 16/32 MiB scoped defaults, < v7x 64 MiB physical


# ----------------------------------------------------------------------------
# helpers
# ----------------------------------------------------------------------------
def _round_up(x, m):
    return (x + m - 1) // m * m


def _pad_to(x, shape):
    pads = [(0, t - s) for s, t in zip(x.shape, shape)]
    if not any(p[1] for p in pads):
        return x
    return jnp.pad(x, pads)


def _layer_norm(x, gamma, beta, d_true):
    """LayerNorm over the last axis. Lane-padded columns (index >= d_true) must be 0."""
    d_pad = x.shape[-1]
    mean = jnp.sum(x, axis=-1, keepdims=True) * (1.0 / d_true)
    xc = x - mean
    if d_pad != d_true:
        lane = lax.broadcasted_iota(jnp.int32, x.shape, x.ndim - 1)
        xc = jnp.where(lane < d_true, xc, 0.0)
    var = jnp.sum(xc * xc, axis=-1, keepdims=True) * (1.0 / d_true)
    inv = lax.rsqrt(var + LN_EPS)
    return xc * inv * gamma + beta


def _rotate_left(x, amt):
    """Static left rotation along the last (lane) axis. (pltpu.roll(x, n-amt, -1) equiv.)"""
    if amt == 0:
        return x
    return jnp.concatenate([x[:, amt:], x[:, :amt]], axis=1)


# ----------------------------------------------------------------------------
# fused linear kernel:  y = [postLN]( [preLN](x) @ W + b [+ residual] )
# ----------------------------------------------------------------------------
def _linear_kernel(*refs, d_ln_true, pre_ln, post_ln, add_residual):
    o_ref = refs[-1]
    x_ref, w_ref, b_ref = refs[0], refs[1], refs[2]
    nxt = 3
    res_ref = None
    if add_residual:
        res_ref = refs[nxt]
        nxt += 1
    g_ref = be_ref = None
    if pre_ln or post_ln:
        g_ref, be_ref = refs[nxt], refs[nxt + 1]

    x = x_ref[...]
    if pre_ln:
        h = _layer_norm(x.astype(jnp.float32),
                        g_ref[...].astype(jnp.float32),
                        be_ref[...].astype(jnp.float32), d_ln_true)
        h = h.astype(x.dtype)            # keep MXU operands in the input dtype
    else:
        h = x

    y = jnp.dot(h, w_ref[...], preferred_element_type=jnp.float32)
    y = y + b_ref[...].astype(jnp.float32)
    if add_residual:
        y = y + res_ref[...].astype(jnp.float32)
    if post_ln:
        y = _layer_norm(y, g_ref[...].astype(jnp.float32),
                        be_ref[...].astype(jnp.float32), d_ln_true)
    o_ref[...] = y.astype(o_ref.dtype)


def _linear(x, w, b, *, residual=None, ln_weight=None, pre_ln=False, post_ln=False,
            ln_d_true=1, out_dtype=None, tm=256):
    """Token-tiled fused linear. x:(N,Din) w:(Din,Dout) b:(1,Dout)."""
    assert not (pre_ln and post_ln)
    if pre_ln or post_ln:
        assert ln_weight is not None
    N, d_in = x.shape
    d_out = w.shape[1]
    out_dtype = out_dtype or x.dtype

    tm_eff = min(tm, _round_up(N, 8))
    n_pad = _round_up(N, tm_eff)
    x_p = _pad_to(x, (n_pad, d_in))

    in_specs = [pl.BlockSpec((tm_eff, d_in), lambda i: (i, 0)),
                pl.BlockSpec((d_in, d_out), lambda i: (0, 0)),
                pl.BlockSpec((1, d_out), lambda i: (0, 0))]
    args = [x_p, w, b]
    if residual is not None:
        in_specs.append(pl.BlockSpec((tm_eff, d_out), lambda i: (i, 0)))
        args.append(_pad_to(residual, (n_pad, d_out)))
    if pre_ln or post_ln:
        g, be = ln_weight
        in_specs += [pl.BlockSpec((1, g.shape[-1]), lambda i: (0, 0)),
                     pl.BlockSpec((1, be.shape[-1]), lambda i: (0, 0))]
        args += [g, be]

    kernel = functools.partial(_linear_kernel, d_ln_true=ln_d_true, pre_ln=pre_ln,
                               post_ln=post_ln, add_residual=residual is not None)
    out = pl.pallas_call(
        kernel,
        out_shape=jax.ShapeDtypeStruct((n_pad, d_out), out_dtype),
        grid_spec=pltpu.PrefetchScalarGridSpec(
            num_scalar_prefetch=0,
            grid=(n_pad // tm_eff,),
            in_specs=in_specs,
            out_specs=pl.BlockSpec((tm_eff, d_out), lambda i: (i, 0))),
        compiler_params=pltpu.CompilerParams(
            dimension_semantics=("parallel",),
            vmem_limit_bytes=_VMEM_LIMIT),
    )(*args)
    return out[:N]


# ----------------------------------------------------------------------------
# attention core kernel (per batch, head, q-tile): rel-shift + softmax + PV
# ----------------------------------------------------------------------------
def _attn_core_kernel(q_ref, k_ref, v_ref, r_ref, rwb_ref, rrb_ref, mask_ref, o_ref,
                      *, qlen, scale):
    f32 = jnp.float32
    q = q_ref[0, 0]          # (tq, dh)
    k = k_ref[0, 0]          # (Kp, dh)
    v = v_ref[0, 0]          # (Kp, dh)
    rk = r_ref[0]            # (Kp, dh)
    rwb = rwb_ref[0]         # (1, dh)
    rrb = rrb_ref[0]         # (1, dh)

    dims = (((1,), (1,)), ((), ()))
    ac = lax.dot_general(q + rwb, k, dims, preferred_element_type=f32)   # (tq, Kp)
    bd = lax.dot_general(q + rrb, rk, dims, preferred_element_type=f32)  # (tq, Kp)

    # Relative shift: row i (global) of BD is left-rotated by (qlen - 1 - i).
    # Done with O(log qlen) static lane rotations + per-row bit-mask selects;
    # positions that differ from the PyTorch pad/reshape trick are all masked.
    tq, kp = ac.shape
    t = pl.program_id(2)
    row = lax.broadcasted_iota(jnp.int32, (tq, kp), 0) + t * tq
    shift = (qlen - 1) - row
    nbits = max(1, (qlen - 1).bit_length())
    for bit in range(nbits):
        amt = 1 << bit
        rolled = _rotate_left(bd, amt)
        bd = jnp.where((shift & amt) != 0, rolled, bd)

    s = (ac + bd) * scale
    s = jnp.where(mask_ref[...] > 0.5, -1e30, s)   # -1e30 underflows to exact 0 prob

    m = jnp.max(s, axis=-1, keepdims=True)
    p = jnp.exp(s - m)
    denom = jnp.sum(p, axis=-1, keepdims=True)
    p = p / denom
    av = jnp.dot(p.astype(v.dtype), v, preferred_element_type=f32)       # (tq, dh)
    o_ref[0, 0] = av.astype(o_ref.dtype)


def _rel_attention_core(q, k, v, rk, rwb, rrb, mask, *, qlen, scale, out_dtype):
    bsz, n_head, q_pad, dh = q.shape
    k_pad = k.shape[2]
    tq = q_pad if q_pad <= 128 else 128
    assert q_pad % tq == 0
    grid = (bsz, n_head, q_pad // tq)
    kernel = functools.partial(_attn_core_kernel, qlen=qlen, scale=scale)
    return pl.pallas_call(
        kernel,
        out_shape=jax.ShapeDtypeStruct((bsz, n_head, q_pad, dh), out_dtype),
        grid_spec=pltpu.PrefetchScalarGridSpec(
            num_scalar_prefetch=0,
            grid=grid,
            in_specs=[
                pl.BlockSpec((1, 1, tq, dh), lambda b, h, t: (b, h, t, 0)),   # q
                pl.BlockSpec((1, 1, k_pad, dh), lambda b, h, t: (b, h, 0, 0)),  # k
                pl.BlockSpec((1, 1, k_pad, dh), lambda b, h, t: (b, h, 0, 0)),  # v
                pl.BlockSpec((1, k_pad, dh), lambda b, h, t: (h, 0, 0)),        # r_k
                pl.BlockSpec((1, 1, dh), lambda b, h, t: (h, 0, 0)),            # r_w_bias
                pl.BlockSpec((1, 1, dh), lambda b, h, t: (h, 0, 0)),            # r_r_bias
                pl.BlockSpec((tq, k_pad), lambda b, h, t: (t, 0)),              # mask
            ],
            out_specs=pl.BlockSpec((1, 1, tq, dh), lambda b, h, t: (b, h, t, 0))),
        compiler_params=pltpu.CompilerParams(
            dimension_semantics=("parallel", "parallel", "parallel"),
            vmem_limit_bytes=_VMEM_LIMIT),
    )(q, k, v, rk, rwb, rrb, mask)


# ----------------------------------------------------------------------------
# position-wise FF kernel, d_inner chunked with a VMEM f32 accumulator
# ----------------------------------------------------------------------------
def _ffn_kernel(x_ref, w1_ref, b1_ref, w2_ref, b2_ref, g_ref, be_ref, o_ref,
                h_scr, acc_scr, *, d_model_true, pre_lnorm, activation):
    kk = pl.program_id(1)

    @pl.when(kk == 0)
    def _init():
        x = x_ref[...]
        if pre_lnorm:
            h = _layer_norm(x.astype(jnp.float32),
                            g_ref[...].astype(jnp.float32),
                            be_ref[...].astype(jnp.float32), d_model_true)
            h_scr[...] = h.astype(h_scr.dtype)
        else:
            h_scr[...] = x.astype(h_scr.dtype)
        acc_scr[...] = jnp.zeros_like(acc_scr)

    z = jnp.dot(h_scr[...], w1_ref[...], preferred_element_type=jnp.float32)
    z = z + b1_ref[...].astype(jnp.float32)
    if activation == 'relu':
        z = jnp.maximum(z, 0.0)
    elif activation == 'gelu':
        z = jax.nn.gelu(z, approximate=False)   # exact erf GELU == torch.nn.GELU()
    else:
        raise ValueError(activation)

    w2 = w2_ref[...]
    acc_scr[...] += jnp.dot(z.astype(w2.dtype), w2, preferred_element_type=jnp.float32)

    @pl.when(kk == pl.num_programs(1) - 1)
    def _finish():
        x = x_ref[...].astype(jnp.float32)
        y = acc_scr[...] + b2_ref[...].astype(jnp.float32)
        if pre_lnorm:
            out = y + x
        else:
            out = _layer_norm(x + y, g_ref[...].astype(jnp.float32),
                              be_ref[...].astype(jnp.float32), d_model_true)
        o_ref[...] = out.astype(o_ref.dtype)


def _positionwise_ff(x, p, *, d_model_true, pre_lnorm, activation, tm=256, dk=512):
    N, d_pad = x.shape
    d_inner_p = p['w1'].shape[1]
    dk_eff = min(dk, d_inner_p)
    assert d_inner_p % dk_eff == 0

    tm_eff = min(tm, _round_up(N, 8))
    n_pad = _round_up(N, tm_eff)
    x_p = _pad_to(x, (n_pad, d_pad))
    grid = (n_pad // tm_eff, d_inner_p // dk_eff)

    kernel = functools.partial(_ffn_kernel, d_model_true=d_model_true,
                               pre_lnorm=pre_lnorm, activation=activation)
    out = pl.pallas_call(
        kernel,
        out_shape=jax.ShapeDtypeStruct((n_pad, d_pad), x.dtype),
        grid_spec=pltpu.PrefetchScalarGridSpec(
            num_scalar_prefetch=0,
            grid=grid,
            in_specs=[
                pl.BlockSpec((tm_eff, d_pad), lambda i, k: (i, 0)),   # x (resident over k)
                pl.BlockSpec((d_pad, dk_eff), lambda i, k: (0, k)),   # w1 chunk
                pl.BlockSpec((1, dk_eff), lambda i, k: (0, k)),       # b1 chunk
                pl.BlockSpec((dk_eff, d_pad), lambda i, k: (k, 0)),   # w2 chunk
                pl.BlockSpec((1, d_pad), lambda i, k: (0, 0)),        # b2
                pl.BlockSpec((1, d_pad), lambda i, k: (0, 0)),        # gamma
                pl.BlockSpec((1, d_pad), lambda i, k: (0, 0)),        # beta
            ],
            out_specs=pl.BlockSpec((tm_eff, d_pad), lambda i, k: (i, 0)),
            scratch_shapes=[pltpu.VMEM((tm_eff, d_pad), x.dtype),       # cached LN(x)/x
                            pltpu.VMEM((tm_eff, d_pad), jnp.float32)]),  # accumulator
        compiler_params=pltpu.CompilerParams(
            dimension_semantics=("parallel", "arbitrary"),
            vmem_limit_bytes=_VMEM_LIMIT),
    )(x_p, p['w1'], p['b1'], p['w2'], p['b2'], p['g'], p['be'])
    return out[:N]


# ----------------------------------------------------------------------------
# full decoder layer
# ----------------------------------------------------------------------------
def rel_partial_learnable_decoder_layer(dec_inp, r, r_w_bias, r_r_bias, dec_attn_mask,
                                        params, *, n_head, d_head, pre_lnorm,
                                        activation_function, tm=256, dk_inner=512):
    qlen, bsz, d_model = dec_inp.shape
    rlen = r.shape[0]
    klen = qlen
    assert rlen == klen, "kernel assumes rlen == klen (no external memory)"
    hd = n_head * d_head
    dtype = dec_inp.dtype

    # padded (lane-dense) sizes
    d_pad = _round_up(d_model, 128)
    d_inner = params['w1'].shape[1]
    di_pad = _round_up(d_inner, 128)
    dk_eff = min(dk_inner, di_pad)
    di_pad = _round_up(di_pad, dk_eff)
    k_pad = _round_up(klen, 128)
    tq = min(128, _round_up(qlen, 8))
    q_pad = _round_up(qlen, tq)

    # pad parameters once (zero pads keep the math exact; LN uses true d_model)
    w_qkv = _pad_to(params['w_qkv'], (d_pad, 3 * hd)); b_qkv = params['b_qkv']
    w_r = _pad_to(params['w_r'], (d_pad, hd));         b_r = params['b_r']
    w_o = _pad_to(params['w_o'], (hd, d_pad));         b_o = _pad_to(params['b_o'], (1, d_pad))
    g_attn = _pad_to(params['g_attn'], (1, d_pad));    be_attn = _pad_to(params['b_attn'], (1, d_pad))
    w1 = _pad_to(params['w1'], (d_pad, di_pad));       b1 = _pad_to(params['b1'], (1, di_pad))
    w2 = _pad_to(params['w2'], (di_pad, d_pad));       b2 = _pad_to(params['b2'], (1, d_pad))
    g_ff = _pad_to(params['g_ff'], (1, d_pad));        be_ff = _pad_to(params['b_ff'], (1, d_pad))

    x2d = _pad_to(dec_inp.reshape(qlen * bsz, d_model), (qlen * bsz, d_pad))
    r2d = _pad_to(r, (rlen, d_pad))

    # 1) projections
    qkv = _linear(x2d, w_qkv, b_qkv, pre_ln=pre_lnorm,
                  ln_weight=(g_attn, be_attn) if pre_lnorm else None,
                  ln_d_true=d_model, tm=tm)                               # (N, 3*hd)
    r_head_k = _linear(r2d, w_r, b_r, tm=tm)                              # (rlen, hd)

    # 2) head layout (wrapper-side plumbing only)
    heads = qkv.reshape(qlen, bsz, 3, n_head, d_head).transpose(2, 1, 3, 0, 4)
    q = _pad_to(heads[0], (bsz, n_head, q_pad, d_head))
    k = _pad_to(heads[1], (bsz, n_head, k_pad, d_head))
    v = _pad_to(heads[2], (bsz, n_head, k_pad, d_head))
    rk = _pad_to(r_head_k.reshape(rlen, n_head, d_head).transpose(1, 0, 2),
                 (n_head, k_pad, d_head))
    rwb = r_w_bias.reshape(n_head, 1, d_head).astype(dtype)
    rrb = r_r_bias.reshape(n_head, 1, d_head).astype(dtype)
    # pad region of the mask must be masked (1.0): rel-shift wraps into those lanes
    mask = jnp.pad(dec_attn_mask.astype(jnp.float32),
                   ((0, q_pad - qlen), (0, k_pad - klen)), constant_values=1.0)

    # 3) attention core
    scale = 1.0 / (d_head ** 0.5)
    attn_vec = _rel_attention_core(q, k, v, rk, rwb, rrb, mask,
                                   qlen=qlen, scale=scale, out_dtype=dtype)
    attn_vec = attn_vec[:, :, :qlen, :].transpose(2, 0, 1, 3).reshape(qlen * bsz, hd)

    # 4) output projection + residual (+ post-LN)
    attn_out = _linear(attn_vec, w_o, b_o, residual=x2d,
                       post_ln=not pre_lnorm,
                       ln_weight=None if pre_lnorm else (g_attn, be_attn),
                       ln_d_true=d_model, tm=tm, out_dtype=dtype)          # (N, d_pad)

    # 5) position-wise feed-forward
    out = _positionwise_ff(attn_out,
                           dict(w1=w1, b1=b1, w2=w2, b2=b2, g=g_ff, be=be_ff),
                           d_model_true=d_model, pre_lnorm=pre_lnorm,
                           activation=activation_function, tm=tm, dk=dk_eff)

    return out[:, :d_model].reshape(qlen, bsz, d_model)


# ----------------------------------------------------------------------------
# pure-JAX reference mirroring the PyTorch forward (eval mode)
# ----------------------------------------------------------------------------
def _rel_shift_ref(x):
    b, n, i, j = x.shape
    zp = jnp.zeros((b, n, i, 1), x.dtype)
    xp = jnp.concatenate([zp, x], axis=3).reshape(b, n, j + 1, i)
    return xp[:, :, 1:, :].reshape(b, n, i, j)


def reference_decoder_layer(dec_inp, r, r_w_bias, r_r_bias, attn_mask, params, *,
                            n_head, d_head, pre_lnorm, activation_function):
    def ln(x, g, b):
        m = jnp.mean(x, axis=-1, keepdims=True)
        v = jnp.mean((x - m) ** 2, axis=-1, keepdims=True)
        return (x - m) / jnp.sqrt(v + LN_EPS) * g + b

    def act(z):
        if activation_function == 'relu':
            return jnp.maximum(z, 0.0)
        return jax.nn.gelu(z, approximate=False)

    qlen, bsz, _ = dec_inp.shape
    rlen = r.shape[0]
    scale = 1.0 / (d_head ** 0.5)

    w = dec_inp.astype(jnp.float32)
    h = ln(w, params['g_attn'][0], params['b_attn'][0]) if pre_lnorm else w
    w_heads = h @ params['w_qkv'] + params['b_qkv'][0]
    r_head_k = r.astype(jnp.float32) @ params['w_r'] + params['b_r'][0]

    q, k, v = jnp.split(w_heads, 3, axis=-1)
    q = q.reshape(qlen, bsz, n_head, d_head)
    k = k.reshape(qlen, bsz, n_head, d_head)
    v = v.reshape(qlen, bsz, n_head, d_head)
    r_head_k = r_head_k.reshape(rlen, n_head, d_head)

    ac = jnp.einsum('ibnd,jbnd->bnij', q + r_w_bias, k)
    bd = _rel_shift_ref(jnp.einsum('ibnd,jnd->bnij', q + r_r_bias, r_head_k))
    score = (ac + bd) * scale
    score = jnp.where(attn_mask[None, None, :, :], -jnp.inf, score)
    prob = jax.nn.softmax(score, axis=3)
    attn_vec = jnp.einsum('bnij,jbnd->ibnd', prob, v).reshape(qlen, bsz, n_head * d_head)
    attn_out = attn_vec @ params['w_o'] + params['b_o'][0]
    attn_o = (w + attn_out) if pre_lnorm else ln(w + attn_out,
                                                 params['g_attn'][0], params['b_attn'][0])

    hf = ln(attn_o, params['g_ff'][0], params['b_ff'][0]) if pre_lnorm else attn_o
    z = act(hf @ params['w1'] + params['b1'][0])
    y = z @ params['w2'] + params['b2'][0]
    return (y + attn_o) if pre_lnorm else ln(attn_o + y,
                                             params['g_ff'][0], params['b_ff'][0])


# ----------------------------------------------------------------------------
# deterministic parameter init (weights stored as (in, out) for row-vector matmul)
# ----------------------------------------------------------------------------
def init_decoder_params(key, d_model, d_inner, n_head, d_head, dtype=jnp.float32):
    keys = jax.random.split(key, 9)

    def linear_init(k, din, dout):
        kw, kb = jax.random.split(k)
        lim = 1.0 / (din ** 0.5)
        return (jax.random.uniform(kw, (din, dout), dtype, -lim, lim),
                jax.random.uniform(kb, (1, dout), dtype, -lim, lim))

    hd = n_head * d_head
    w_qkv, b_qkv = linear_init(keys[0], d_model, 3 * hd)
    w_r, b_r = linear_init(keys[1], d_model, hd)
    w_o, b_o = linear_init(keys[2], hd, d_model)
    w1, b1 = linear_init(keys[3], d_model, d_inner)
    w2, b2 = linear_init(keys[4], d_inner, d_model)
    return dict(
        w_qkv=w_qkv, b_qkv=b_qkv, w_r=w_r, b_r=b_r, w_o=w_o, b_o=b_o,
        g_attn=1.0 + 0.1 * jax.random.normal(keys[5], (1, d_model), dtype),
        b_attn=0.1 * jax.random.normal(keys[6], (1, d_model), dtype),
        w1=w1, b1=b1, w2=w2, b2=b2,
        g_ff=1.0 + 0.1 * jax.random.normal(keys[7], (1, d_model), dtype),
        b_ff=0.1 * jax.random.normal(keys[8], (1, d_model), dtype),
    )


if __name__ == "__main__":
    n_head, d_head = 2, 16
    d_model = n_head * d_head        # 32
    d_inner = 64
    qlen, bsz = 8, 2

    key = jax.random.PRNGKey(0)
    kx, kr, kb1, kb2, kp = jax.random.split(key, 5)
    dec_inp = jax.random.normal(kx, (qlen, bsz, d_model), jnp.float32)
    r = jax.random.normal(kr, (qlen, d_model), jnp.float32)
    r_w_bias = 0.1 * jax.random.normal(kb1, (n_head, d_head), jnp.float32)
    r_r_bias = 0.1 * jax.random.normal(kb2, (n_head, d_head), jnp.float32)
    dec_attn_mask = jnp.triu(jnp.ones((qlen, qlen), jnp.int32), k=1).astype(jnp.bool_)
    params = init_decoder_params(kp, d_model, d_inner, n_head, d_head)

    ok = True
    # NOTE: pre_lnorm=False is the only runnable path of the original PyTorch module
    # (its pre_lnorm attention branch raises NameError); pre_lnorm=True is checked
    # against the intended Transformer-XL pre-norm semantics.
    for pre_lnorm in (False, True):
        for act_fn in ("relu", "gelu"):
            out = rel_partial_learnable_decoder_layer(
                dec_inp, r, r_w_bias, r_r_bias, dec_attn_mask, params,
                n_head=n_head, d_head=d_head, pre_lnorm=pre_lnorm,
                activation_function=act_fn)
            out = jax.block_until_ready(out)
            ref = reference_decoder_layer(
                dec_inp, r, r_w_bias, r_r_bias, dec_attn_mask, params,
                n_head=n_head, d_head=d_head, pre_lnorm=pre_lnorm,
                activation_function=act_fn)
            if not jnp.allclose(out, ref.astype(out.dtype), atol=1e-3, rtol=1e-3):
                ok = False
                print("mismatch", pre_lnorm, act_fn,
                      float(jnp.max(jnp.abs(out - ref.astype(out.dtype)))))

    if ok:
        print("KERNEL_OK")
</pallas_src>

<mosaic_0001>
module attributes {stable_mosaic.version = 11 : i64} {
  func.func @_linear_kernel(%arg0: i32, %arg1: memref<16x128xf32, #tpu.memory_space<vmem>>, %arg2: memref<128x96xf32, #tpu.memory_space<vmem>>, %arg3: memref<1x96xf32, #tpu.memory_space<vmem>>, %arg4: memref<16x96xf32, #tpu.memory_space<vmem>>) attributes {dimension_semantics = [#tpu.dimension_semantics<parallel>], iteration_bounds = array<i64: 1>, scalar_prefetch = 0 : i64, scratch_operands = 0 : i64, tpu.core_type = #tpu.core_type<tc>, window_params = [{transform_indices = @transform_0, window_bounds = array<i64: 16, 128>}, {pipeline_mode = #tpu.pipeline_mode<synchronous>, transform_indices = @transform_1, window_bounds = array<i64: 128, 96>}, {pipeline_mode = #tpu.pipeline_mode<synchronous>, transform_indices = @transform_2, window_bounds = array<i64: 1, 96>}, {transform_indices = @transform_3, window_bounds = array<i64: 16, 96>}]} {
    %c0 = arith.constant 0 : index
    %c0_0 = arith.constant 0 : index
    %0 = vector.load %arg1[%c0, %c0_0] : memref<16x128xf32, #tpu.memory_space<vmem>>, vector<16x128xf32>
    %c0_1 = arith.constant 0 : index
    %c0_2 = arith.constant 0 : index
    %1 = vector.load %arg2[%c0_1, %c0_2] : memref<128x96xf32, #tpu.memory_space<vmem>>, vector<128x96xf32>
    %cst = arith.constant dense<0.000000e+00> : vector<16x96xf32>
    %2 = tpu.matmul %0, %1, %cst {dimension_numbers = #tpu.dot_dimension_numbers<[1], [0], [0], [1], [0, 0, 1, 1], [], []>} : vector<16x128xf32>, vector<128x96xf32>, vector<16x96xf32> -> vector<16x96xf32>
    %c0_3 = arith.constant 0 : index
    %c0_4 = arith.constant 0 : index
    %3 = vector.load %arg3[%c0_3, %c0_4] : memref<1x96xf32, #tpu.memory_space<vmem>>, vector<1x96xf32>
    %4 = vector.broadcast %3 : vector<1x96xf32> to vector<16x96xf32>
    %5 = arith.addf %2, %4 : vector<16x96xf32>
    %c0_5 = arith.constant 0 : index
    %c0_6 = arith.constant 0 : index
    %6 = vector.load %arg4[%c0_5, %c0_6] : memref<16x96xf32, #tpu.memory_space<vmem>>, vector<16x96xf32>
    tpu.vector_store %arg4[%c0_5, %c0_6], %5 {strides = array<i32>} : memref<16x96xf32, #tpu.memory_space<vmem>>, vector<16x96xf32>,
    return
  }
  func.func @transform_0(%arg0: i32) -> (i32, i32) {
    %c0_i32 = arith.constant 0 : i32
    %c0_i32_0 = arith.constant 0 : i32
    return %arg0, %c0_i32 : i32, i32
  }
  func.func @transform_1(%arg0: i32) -> (i32, i32) {
    %c0_i32 = arith.constant 0 : i32
    %c0_i32_0 = arith.constant 0 : i32
    %c0_i32_1 = arith.constant 0 : i32
    return %c0_i32, %c0_i32_0 : i32, i32
  }
  func.func @transform_2(%arg0: i32) -> (i32, i32) {
    %c0_i32 = arith.constant 0 : i32
    %c0_i32_0 = arith.constant 0 : i32
    %c0_i32_1 = arith.constant 0 : i32
    return %c0_i32, %c0_i32_0 : i32, i32
  }
  func.func @transform_3(%arg0: i32) -> (i32, i32) {
    %c0_i32 = arith.constant 0 : i32
    %c0_i32_0 = arith.constant 0 : i32
    return %arg0, %c0_i32 : i32, i32
  }
}

</mosaic_0001>

<bundles_post_ra>
// kernel: tpu_custom_call.1
= control target key start
LH: loop header
LB: loop body
LE: loop exit
PB: predicated region body
PF: predicated region fallthrough
CT: control target
= control target key end

     0   :  { %s210_s0 = inlined_call_operand.vmem [shape: f32[16,128], index: 0, kind: input, shape index: {}]   ;;  %s211_s1 = inlined_call_operand.vmem [shape: f32[128,96], index: 1, kind: input, shape index: {}]   ;;  %s212_s2 = inlined_call_operand.vmem [shape: f32[1,96], index: 2, kind: input, shape index: {}]   ;;  %s213_s3 = inlined_call_operand.hbm [shape: f32[16,96], index: 3, kind: output, shape index: {}]  }
   0x1   :  { %v32_v0 = vld [vmem:[%s211_s1 + $0x78] sm:$0xff]  ;;  %v31_v1 = vld [vmem:[%s211_s1 + $0x70] sm:$0xff]  ;;  %v30_v2 = vld [vmem:[%s211_s1 + $0x68] sm:$0xff] }
   0x2   :  { %37 = vmatpush.msra.mxu0 %v32_v0  ;;  %81 = vmatpush.msra.mxu1 %v32_v0  ;;  %v29_v3 = vld [vmem:[%s211_s1 + $0x60] sm:$0xff]  ;;  %v28_v4 = vld [vmem:[%s211_s1 + $0x58] sm:$0xff] }
   0x4   :  { %38 = vmatpush.msra.mxu0 %v31_v1  ;;  %82 = vmatpush.msra.mxu1 %v31_v1 }
   0x6   :  { %39 = vmatpush.msra.mxu0 %v30_v2  ;;  %83 = vmatpush.msra.mxu1 %v30_v2 }
   0x7   :  { %8 = vsyncpa [#allocation3], 0  ;;  %v27_v5 = vld [vmem:[%s211_s1 + $0x50] sm:$0xff]  ;;  %v26_v6 = vld [vmem:[%s211_s1 + $0x48] sm:$0xff]  ;;  %s127_s23 = smov [#allocation2]   ;;  %s69_s26 = sshll.u32 %s213_s3, 4  ;;  %s70_s26 = int_to_ptr.hbm [resolvable:$true] %s69_s26 }
   0x8   :  { %40 = vmatpush.msra.mxu0 %v29_v3  ;;  %84 = vmatpush.msra.mxu1 %v29_v3  ;;  %v25_v7 = vld [vmem:[%s211_s1 + $0x40] sm:$0xff]  ;;  %v24_v8 = vld [vmem:[%s211_s1 + $0x38] sm:$0xff]  ;;  %v23_v9 = vld [vmem:[%s211_s1 + $0x30] sm:$0xff]  ;;  %vm60_vm0 = vcmask 785408   ;;  %s129_s27 = smov 8  }
   0x9   :  { %v22_v10 = vld [vmem:[%s211_s1 + $0x28] sm:$0xff]  ;;  %v21_v11 = vld [vmem:[%s211_s1 + $0x20] sm:$0xff]  ;;  %v20_v12 = vld [vmem:[%s211_s1 + $0x18] sm:$0xff] }
   0xa   :  { %41 = vmatpush.msra.mxu0 %v28_v4  ;;  %85 = vmatpush.msra.mxu1 %v28_v4  ;;  %v19_v13 = vld [vmem:[%s211_s1 + $0x10] sm:$0xff]  ;;  %v18_v14 = vld [vmem:[%s211_s1 + $0x8] sm:$0xff]  ;;  %v17_v15 = vld [vmem:[%s211_s1] sm:$0xff]  ;;  %s67_s1 = sshll.u32 %s127_s23, 4  ;;  %s68_s1 = int_to_ptr.vmem [resolvable:$true] %s67_s1 }
   0xb   :  { %v15_v16 = vld [vmem:[%s210_s0] sm:$0xff]  ;;  %v16_v17 = vld [vmem:[%s210_s0 + $0x8] sm:$0xff]  ;;  %s128_s0 = smov 128  }
   0xc   :  { %42 = vmatpush.msra.mxu0 %v27_v5  ;;  %86 = vmatpush.msra.mxu1 %v27_v5  ;;  %v100_v18 = vld [vmem:[%s212_s2] ss:$0 sm:$0xff] }
   0xe   :  { %43 = vmatpush.msra.mxu0 %v26_v6  ;;  %87 = vmatpush.msra.mxu1 %v26_v6 }
  0x10   :  { %44 = vmatpush.msra.mxu0 %v25_v7  ;;  %88 = vmatpush.msra.mxu1 %v25_v7 }
  0x12   :  { %45 = vmatpush.msra.mxu0 %v24_v8  ;;  %89 = vmatpush.msra.mxu1 %v24_v8 }
  0x14   :  { %46 = vmatpush.msra.mxu0 %v23_v9  ;;  %90 = vmatpush.msra.mxu1 %v23_v9 }
  0x16   :  { %47 = vmatpush.msra.mxu0 %v22_v10  ;;  %91 = vmatpush.msra.mxu1 %v22_v10 }
  0x18   :  { %48 = vmatpush.msra.mxu0 %v21_v11  ;;  %92 = vmatpush.msra.mxu1 %v21_v11 }
  0x1a   :  { %49 = vmatpush.msra.mxu0 %v20_v12  ;;  %93 = vmatpush.msra.mxu1 %v20_v12 }
  0x1c   :  { %50 = vmatpush.msra.mxu0 %v19_v13  ;;  %94 = vmatpush.msra.mxu1 %v19_v13 }
  0x1e   :  { %51 = vmatpush.msra.mxu0 %v18_v14  ;;  %95 = vmatpush.msra.mxu1 %v18_v14 }
  0x20   :  { %52 = vmatpush.msra.mxu0 %v17_v15  ;;  %96 = vmatpush.msra.mxu1 %v17_v15 }
  0x21   :  { %53 = vmatmul.f32.vlgmr.msra.gmra.mxu0 %v15_v16  ;;  %56 = vmatmul.f32.vlgmr.msra.gmra.mxu1 %v16_v17 }
  0x9e   :  { %v54_v19 = vpop.f32.mrf.mxu0  ;;  %v57_v20 = vpop.f32.mrf.mxu1 }
  0x9f   :  { %v55_v21 = vadd.f32 %v100_v18, %v54_v19  ;;  %v58_v22 = vadd.f32 %v100_v18, %v57_v20 }
  0xa1   :  { %61 = vst.msk [vmem:[#allocation2] sm:$0xff] %vm60_vm0, %v55_v21 }
  0xa2   :  { %62 = vst.msk [vmem:[#allocation2 + $0x8] sm:$0xff] %vm60_vm0, %v58_v22 }
  0xa3   :  { %75 = dma.vmem_to_hbm [thread:$0]  %s68_s1, 256, %s70_s26, [#allocation3], %s128_s0, %s128_s0, %s129_s27  }
  0xa4   :  { %125 = dma.done.wait [#allocation3], 256  }
  0xa5   :  { %126 = vsyncadd [#allocation3], 4294967040 }
  0xa6   :  { %80 = vsyncpa [#allocation3], 1 }

</bundles_post_ra>
